<compile_context>
chip_gen: v7x
topology: tpu7x:2x2x1
jax: 0.10.0
libtpu: 0.0.40
codegen_flags: <defaults>
</compile_context>

<pallas_src>
import functools
import numpy as np
import jax
import jax.numpy as jnp
from jax.experimental import pallas as pl
from jax.experimental.pallas import tpu as pltpu

IMPOSSIBLE = -10000.0


def crf_viterbi_kernel(feat_ref, mask_ref, w_ref, b_ref, trans_ref, stop_ref,
                       score_ref, tag_ref, bps_ref, ms_ref, *, start_idx):
    """One (batch-block, time-block) grid step of the Viterbi trellis.

    feat_ref : [Lt, D, Bt] bf16  time-major features (D on sublanes, batch on lanes)
    mask_ref : [Lt, 1, Bt] f32   per-timestep mask
    w_ref    : [C, D]      bf16  fc.weight
    b_ref    : [C, 1]      f32   fc.bias (column)
    trans_ref: [C, C]      f32   transitions (transitions[i, j]: j -> i)
    stop_ref : [C, 1]      f32   transitions[stop_idx, :] as a column
    score_ref: [1, Bt]     f32   best final score (written at last time block)
    tag_ref  : [1, Bt]     i32   best final tag   (written at last time block)
    bps_ref  : [Lt, C, Bt] i32   backpointers (lane-dense: batch on lanes)
    ms_ref   : [C, Bt]     f32   VMEM scratch: running Viterbi scores, carried
                                 across time blocks of the same batch block.
    """
    Lt, D, Bt = feat_ref.shape
    C = trans_ref.shape[0]
    t_blk = pl.program_id(1)

    @pl.when(t_blk == 0)
    def _():
        row = jax.lax.broadcasted_iota(jnp.int32, (C, Bt), 0)
        ms_ref[...] = jnp.where(row == start_idx, 0.0, IMPOSSIBLE).astype(jnp.float32)

    # Loop invariants hoisted once per (batch, time) block.
    w = w_ref[...]                      # [C, D] bf16
    bias = b_ref[...]                   # [C, 1] f32
    trans = trans_ref[...]              # [C, C] f32
    # transitions[:, j] broadcast over the 128 batch lanes -> one vreg per j,
    # hoisted out of the time loop (JAX does not CSE broadcast_in_dim).
    trans_tiles = [jnp.broadcast_to(trans[:, j:j + 1], (C, Bt)) for j in range(C)]

    def step(t, ms):
        feat_t = feat_ref[t]                                           # [D, Bt] bf16
        emit_t = jnp.dot(w, feat_t,
                         preferred_element_type=jnp.float32) + bias    # [C, Bt] f32
        mask_t = mask_ref[t]                                           # [1, Bt] f32

        # Fused running max/argmax over the previous tag j:
        #   cand_j[i, b] = ms[j, b] + transitions[i, j]
        # Strict '>' keeps the first index on ties (np.argmax semantics).
        best = ms[0:1, :] + trans_tiles[0]                             # [C, Bt]
        best_prev = jnp.zeros((C, Bt), jnp.int32)
        for j in range(1, C):                                          # C tiny: unrolled
            cand = ms[j:j + 1, :] + trans_tiles[j]
            upd = cand > best
            best = jnp.where(upd, cand, best)
            best_prev = jnp.where(upd, j, best_prev)

        # Backpointers are intentionally written for masked (padded) timesteps
        # too, from the stale ms — matches the PyTorch reference; host
        # backtracking only walks the first seq_len of them.
        bps_ref[t] = best_prev
        return jnp.where(mask_t > 0.0, best + emit_t, ms)

    unroll = Lt if Lt <= 8 else 8
    ms = jax.lax.fori_loop(0, Lt, step, ms_ref[...], unroll=unroll)
    ms_ref[...] = ms

    @pl.when(t_blk == pl.num_programs(1) - 1)
    def _():
        final = ms + stop_ref[...]                                     # [C, Bt]
        best = jnp.max(final, axis=0, keepdims=True)                   # [1, Bt]
        row = jax.lax.broadcasted_iota(jnp.int32, (C, Bt), 0)
        tag = jnp.min(jnp.where(final >= best, row, C),
                      axis=0, keepdims=True)                           # first index on ties
        score_ref[...] = best
        tag_ref[...] = tag.astype(jnp.int32)


def init_crf_params(key, in_features, num_tags):
    """Deterministic synthetic parameters mirroring CRF.__init__ shapes."""
    C = num_tags + 2
    start_idx, stop_idx = C - 2, C - 1
    k1, k2, k3 = jax.random.split(key, 3)
    bound = 1.0 / np.sqrt(in_features)
    fc_w = jax.random.uniform(k1, (C, in_features), jnp.float32, -bound, bound)
    fc_b = jax.random.uniform(k2, (C,), jnp.float32, -bound, bound)
    trans = jax.random.normal(k3, (C, C), dtype=jnp.float32)
    trans = trans.at[start_idx, :].set(IMPOSSIBLE)
    trans = trans.at[:, stop_idx].set(IMPOSSIBLE)
    return {"fc_w": fc_w, "fc_b": fc_b, "transitions": trans}


def _pick_time_block(L, D, C, Bt, budget_bytes=8 << 20):
    """Largest divisor of L whose double-buffered per-block working set
    (bf16 features + f32 mask + i32 backpointers) fits under budget_bytes."""
    per_t = 2 * Bt * (2 * D + 4 + 4 * C)      # x2 for double buffering
    best = 1
    for lt in range(1, L + 1):
        if L % lt == 0 and lt * per_t <= budget_bytes:
            best = lt
    return best


def crf_forward(features, masks, params, *, time_block=None, batch_block=128,
                vmem_limit_bytes=None):
    """Pallas-backed CRF.forward (fc + Viterbi trellis). Returns device arrays:
    (best_score [B], best_tag [B], backpointers [B, L, C])."""
    B, L, D = features.shape
    trans = params["transitions"].astype(jnp.float32)
    C = trans.shape[0]
    start_idx, stop_idx = C - 2, C - 1

    Bt = batch_block
    assert Bt % 128 == 0, "batch_block must be a multiple of 128 (lane width)"
    Bp = -(-B // Bt) * Bt

    Lt = time_block if time_block is not None else _pick_time_block(L, D, C, Bt)
    assert L % Lt == 0, "time_block must divide the sequence length"

    # bf16 feature streaming (halves feature DMA bytes); trellis stays f32.
    feats = features.astype(jnp.bfloat16)
    m = masks.astype(jnp.float32)[:, :L]
    if Bp != B:   # padded batch rows have mask == 0 and are sliced off on return
        feats = jnp.pad(feats, ((0, Bp - B), (0, 0), (0, 0)))
        m = jnp.pad(m, ((0, Bp - B), (0, 0)))

    feat_ldb = jnp.transpose(feats, (1, 2, 0))                 # [L, D, Bp] bf16
    mask_l1b = jnp.transpose(m, (1, 0))[:, None, :]            # [L, 1, Bp] f32
    w = params["fc_w"].astype(jnp.bfloat16)                    # [C, D]
    bias = params["fc_b"].astype(jnp.float32).reshape(C, 1)    # [C, 1]
    stop_col = trans[stop_idx].reshape(C, 1)                   # [C, 1]

    rep = lambda b, t: (0, 0)
    out_shapes = (
        jax.ShapeDtypeStruct((1, Bp), jnp.float32),
        jax.ShapeDtypeStruct((1, Bp), jnp.int32),
        jax.ShapeDtypeStruct((L, C, Bp), jnp.int32),
    )
    score, tag, bps = pl.pallas_call(
        functools.partial(crf_viterbi_kernel, start_idx=start_idx),
        out_shape=out_shapes,
        grid_spec=pltpu.PrefetchScalarGridSpec(
            num_scalar_prefetch=0,
            grid=(Bp // Bt, L // Lt),                          # (batch, time)
            in_specs=[
                pl.BlockSpec((Lt, D, Bt), lambda b, t: (t, 0, b)),
                pl.BlockSpec((Lt, 1, Bt), lambda b, t: (t, 0, b)),
                pl.BlockSpec((C, D), rep),
                pl.BlockSpec((C, 1), rep),
                pl.BlockSpec((C, C), rep),
                pl.BlockSpec((C, 1), rep),
            ],
            out_specs=(
                pl.BlockSpec((1, Bt), lambda b, t: (0, b)),
                pl.BlockSpec((1, Bt), lambda b, t: (0, b)),
                pl.BlockSpec((Lt, C, Bt), lambda b, t: (t, 0, b)),
            ),
            scratch_shapes=[pltpu.VMEM((C, Bt), jnp.float32)],
        ),
        compiler_params=pltpu.CompilerParams(
            dimension_semantics=("parallel", "arbitrary"),
            vmem_limit_bytes=vmem_limit_bytes),
    )(feat_ldb, mask_l1b, w, bias, trans, stop_col)

    bps = jnp.transpose(bps, (2, 0, 1))[:B]                    # [B, L, C]
    return score[0, :B], tag[0, :B], bps


def viterbi_backtrack(best_tag, bps, masks):
    """Host-side backtracking, identical to the PyTorch loop (list of lists)."""
    best_tag = np.asarray(best_tag)
    bps = np.asarray(bps)
    masks = np.asarray(masks)
    best_paths = []
    for b in range(bps.shape[0]):
        tag_b = int(best_tag[b])
        seq_len = int(masks[b].sum())
        path = [tag_b]
        for bps_t in reversed(bps[b, :seq_len]):
            tag_b = int(bps_t[tag_b])
            path.append(tag_b)
        best_paths.append(path[-2::-1])
    return best_paths


def crf_forward_ref(features, masks, params):
    """Pure-numpy reference of CRF.forward's score/trellis path."""
    fc_w = np.asarray(params["fc_w"]); fc_b = np.asarray(params["fc_b"])
    trans = np.asarray(params["transitions"])
    feats = np.asarray(features) @ fc_w.T + fc_b                      # [B, L, C]
    B, L, C = feats.shape
    start_idx, stop_idx = C - 2, C - 1
    m = np.asarray(masks, np.float32)
    max_score = np.full((B, C), IMPOSSIBLE, np.float32)
    max_score[:, start_idx] = 0.0
    bps = np.zeros((B, L, C), np.int64)
    for t in range(L):
        acc = max_score[:, None, :] + trans[None, :, :]
        bps[:, t, :] = acc.argmax(-1)
        acc_t = acc.max(-1) + feats[:, t]
        mask_t = m[:, t:t + 1]
        max_score = acc_t * mask_t + max_score * (1.0 - mask_t)
    max_score = max_score + trans[stop_idx]
    return max_score.max(-1), max_score.argmax(-1), bps


if __name__ == "__main__":
    B, L, D, num_tags = 2, 8, 32, 5          # -> C = num_tags + 2 = 7
    key = jax.random.PRNGKey(0)
    kf, kp = jax.random.split(key)

    features = jax.random.normal(kf, (B, L, D), dtype=jnp.float32)
    masks = jnp.array([[1.0] * L, [1.0] * 6 + [0.0] * 2], dtype=jnp.float32)
    params = init_crf_params(kp, D, num_tags)

    # time_block=4 exercises the time-axis grid (Viterbi state carried in scratch).
    best_score, best_tag, bps = crf_forward(features, masks, params, time_block=4)
    jax.block_until_ready((best_score, best_tag, bps))
    best_paths = viterbi_backtrack(best_tag, bps, masks)

    # Reference uses the same bf16-rounded features/weights the kernel streams,
    # so differences are only f32 accumulation order.
    feats_q = np.asarray(features.astype(jnp.bfloat16).astype(jnp.float32))
    params_q = {"fc_w": np.asarray(params["fc_w"].astype(jnp.bfloat16).astype(jnp.float32)),
                "fc_b": np.asarray(params["fc_b"]),
                "transitions": np.asarray(params["transitions"])}
    ref_score, ref_tag, _ = crf_forward_ref(feats_q, masks, params_q)

    assert np.allclose(np.asarray(best_score), ref_score, atol=1e-3, rtol=1e-4), \
        (np.asarray(best_score), ref_score)
    assert np.array_equal(np.asarray(best_tag), ref_tag), (np.asarray(best_tag), ref_tag)
    assert len(best_paths) == B and all(len(p) == int(np.asarray(masks)[b].sum())
                                        for b, p in enumerate(best_paths))
    print("KERNEL_OK")
</pallas_src>

<mosaic_0001>
module attributes {stable_mosaic.version = 11 : i64} {
  func.func @crf_viterbi_kernel(%arg0: i32, %arg1: i32, %arg2: memref<4x32x128xbf16, #tpu.memory_space<vmem>>, %arg3: memref<4x1x128xf32, #tpu.memory_space<vmem>>, %arg4: memref<7x32xbf16, #tpu.memory_space<vmem>>, %arg5: memref<7x1xf32, #tpu.memory_space<vmem>>, %arg6: memref<7x7xf32, #tpu.memory_space<vmem>>, %arg7: memref<7x1xf32, #tpu.memory_space<vmem>>, %arg8: memref<1x128xf32, #tpu.memory_space<vmem>>, %arg9: memref<1x128xi32, #tpu.memory_space<vmem>>, %arg10: memref<4x7x128xi32, #tpu.memory_space<vmem>>, %arg11: memref<7x128xf32, #tpu.memory_space<vmem>>) attributes {dimension_semantics = [#tpu.dimension_semantics<parallel>, #tpu.dimension_semantics<arbitrary>], iteration_bounds = array<i64: 1, 2>, scalar_prefetch = 0 : i64, scratch_operands = 1 : i64, tpu.core_type = #tpu.core_type<tc>, window_params = [{transform_indices = @transform_0, window_bounds = array<i64: 4, 32, 128>}, {transform_indices = @transform_1, window_bounds = array<i64: 4, 1, 128>}, {pipeline_mode = #tpu.pipeline_mode<synchronous>, transform_indices = @transform_2, window_bounds = array<i64: 7, 32>}, {pipeline_mode = #tpu.pipeline_mode<synchronous>, transform_indices = @transform_3, window_bounds = array<i64: 7, 1>}, {pipeline_mode = #tpu.pipeline_mode<synchronous>, transform_indices = @transform_4, window_bounds = array<i64: 7, 7>}, {pipeline_mode = #tpu.pipeline_mode<synchronous>, transform_indices = @transform_5, window_bounds = array<i64: 7, 1>}, {transform_indices = @transform_6, window_bounds = array<i64: 1, 128>}, {transform_indices = @transform_7, window_bounds = array<i64: 1, 128>}, {transform_indices = @transform_8, window_bounds = array<i64: 4, 7, 128>}]} {
    %c0_i32 = arith.constant 0 : i32
    %0 = arith.cmpi eq, %arg1, %c0_i32 : i32
    %1 = arith.extui %0 : i1 to i32
    %c0_i32_0 = arith.constant 0 : i32
    %2 = arith.cmpi ne, %1, %c0_i32_0 : i32
    scf.if %2 {
      %292 = tpu.iota {dimensions = array<i32: 0>} : vector<7x128xi32>
      %c5_i32_70 = arith.constant 5 : i32
      %293 = vector.broadcast %c5_i32_70 : i32 to vector<7x128xi32>
      %294 = arith.cmpi eq, %292, %293 : vector<7x128xi32>
      %cst_71 = arith.constant 0.000000e+00 : f32
      %cst_72 = arith.constant -1.000000e+04 : f32
      %295 = vector.broadcast %cst_71 : f32 to vector<7x128xf32>
      %296 = vector.broadcast %cst_72 : f32 to vector<7x128xf32>
      %297 = arith.select %294, %295, %296 : vector<7x128xi1>, vector<7x128xf32>
      %c0_73 = arith.constant 0 : index
      %c0_74 = arith.constant 0 : index
      %298 = vector.load %arg11[%c0_73, %c0_74] : memref<7x128xf32, #tpu.memory_space<vmem>>, vector<7x128xf32>
      tpu.vector_store %arg11[%c0_73, %c0_74], %297 {strides = array<i32>} : memref<7x128xf32, #tpu.memory_space<vmem>>, vector<7x128xf32>,
    } else {
    }
    %c0 = arith.constant 0 : index
    %c0_1 = arith.constant 0 : index
    %3 = vector.load %arg4[%c0, %c0_1] : memref<7x32xbf16, #tpu.memory_space<vmem>>, vector<7x32xbf16>
    %c0_2 = arith.constant 0 : index
    %c0_3 = arith.constant 0 : index
    %4 = vector.load %arg5[%c0_2, %c0_3] : memref<7x1xf32, #tpu.memory_space<vmem>>, vector<7x1xf32>
    %c0_4 = arith.constant 0 : index
    %c0_5 = arith.constant 0 : index
    %5 = vector.load %arg6[%c0_4, %c0_5] : memref<7x7xf32, #tpu.memory_space<vmem>>, vector<7x7xf32>
    %6 = vector.extract_strided_slice %5 {offsets = [0, 0], sizes = [7, 1], strides = [1, 1]} : vector<7x7xf32> to vector<7x1xf32>
    %7 = vector.shape_cast %6 : vector<7x1xf32> to vector<7x1xf32>
    %8 = vector.broadcast %7 : vector<7x1xf32> to vector<7x128xf32>
    %9 = vector.extract_strided_slice %5 {offsets = [0, 1], sizes = [7, 1], strides = [1, 1]} : vector<7x7xf32> to vector<7x1xf32>
    %10 = vector.shape_cast %9 : vector<7x1xf32> to vector<7x1xf32>
    %11 = vector.broadcast %10 : vector<7x1xf32> to vector<7x128xf32>
    %12 = vector.extract_strided_slice %5 {offsets = [0, 2], sizes = [7, 1], strides = [1, 1]} : vector<7x7xf32> to vector<7x1xf32>
    %13 = vector.shape_cast %12 : vector<7x1xf32> to vector<7x1xf32>
    %14 = vector.broadcast %13 : vector<7x1xf32> to vector<7x128xf32>
    %15 = vector.extract_strided_slice %5 {offsets = [0, 3], sizes = [7, 1], strides = [1, 1]} : vector<7x7xf32> to vector<7x1xf32>
    %16 = vector.shape_cast %15 : vector<7x1xf32> to vector<7x1xf32>
    %17 = vector.broadcast %16 : vector<7x1xf32> to vector<7x128xf32>
    %18 = vector.extract_strided_slice %5 {offsets = [0, 4], sizes = [7, 1], strides = [1, 1]} : vector<7x7xf32> to vector<7x1xf32>
    %19 = vector.shape_cast %18 : vector<7x1xf32> to vector<7x1xf32>
    %20 = vector.broadcast %19 : vector<7x1xf32> to vector<7x128xf32>
    %21 = vector.extract_strided_slice %5 {offsets = [0, 5], sizes = [7, 1], strides = [1, 1]} : vector<7x7xf32> to vector<7x1xf32>
    %22 = vector.shape_cast %21 : vector<7x1xf32> to vector<7x1xf32>
    %23 = vector.broadcast %22 : vector<7x1xf32> to vector<7x128xf32>
    %24 = vector.extract_strided_slice %5 {offsets = [0, 6], sizes = [7, 1], strides = [1, 1]} : vector<7x7xf32> to vector<7x1xf32>
    %25 = vector.shape_cast %24 : vector<7x1xf32> to vector<7x1xf32>
    %26 = vector.broadcast %25 : vector<7x1xf32> to vector<7x128xf32>
    %c0_6 = arith.constant 0 : index
    %c0_7 = arith.constant 0 : index
    %27 = vector.load %arg11[%c0_6, %c0_7] : memref<7x128xf32, #tpu.memory_space<vmem>>, vector<7x128xf32>
    %c0_i32_8 = arith.constant 0 : i32
    %28 = arith.index_cast %c0_i32_8 : i32 to index
    %c0_9 = arith.constant 0 : index
    %c0_10 = arith.constant 0 : index
    %29 = vector.load %arg2[%28, %c0_9, %c0_10] : memref<4x32x128xbf16, #tpu.memory_space<vmem>>, vector<1x32x128xbf16>
    %30 = vector.shape_cast %29 : vector<1x32x128xbf16> to vector<32x128xbf16>
    %cst = arith.constant dense<0.000000e+00> : vector<7x128xf32>
    %31 = tpu.matmul %3, %30, %cst {dimension_numbers = #tpu.dot_dimension_numbers<[1], [0], [0], [1], [0, 0, 1, 1], [], []>} : vector<7x32xbf16>, vector<32x128xbf16>, vector<7x128xf32> -> vector<7x128xf32>
    %32 = vector.broadcast %4 : vector<7x1xf32> to vector<7x128xf32>
    %33 = arith.addf %31, %32 : vector<7x128xf32>
    %34 = arith.index_cast %c0_i32_8 : i32 to index
    %c0_11 = arith.constant 0 : index
    %c0_12 = arith.constant 0 : index
    %35 = vector.load %arg3[%34, %c0_11, %c0_12] : memref<4x1x128xf32, #tpu.memory_space<vmem>>, vector<1x1x128xf32>
    %36 = vector.shape_cast %35 : vector<1x1x128xf32> to vector<1x128xf32>
    %37 = vector.extract_strided_slice %27 {offsets = [0, 0], sizes = [1, 128], strides = [1, 1]} : vector<7x128xf32> to vector<1x128xf32>
    %38 = vector.broadcast %37 : vector<1x128xf32> to vector<7x128xf32>
    %39 = arith.addf %38, %8 : vector<7x128xf32>
    %c0_i32_13 = arith.constant 0 : i32
    %40 = vector.broadcast %c0_i32_13 : i32 to vector<7x128xi32>
    %41 = vector.extract_strided_slice %27 {offsets = [1, 0], sizes = [1, 128], strides = [1, 1]} : vector<7x128xf32> to vector<1x128xf32>
    %42 = vector.broadcast %41 : vector<1x128xf32> to vector<7x128xf32>
    %43 = arith.addf %42, %11 : vector<7x128xf32>
    %44 = arith.cmpf ogt, %43, %39 : vector<7x128xf32>
    %45 = arith.select %44, %43, %39 : vector<7x128xi1>, vector<7x128xf32>
    %c1_i32 = arith.constant 1 : i32
    %46 = vector.broadcast %c1_i32 : i32 to vector<7x128xi32>
    %47 = arith.select %44, %46, %40 : vector<7x128xi1>, vector<7x128xi32>
    %48 = vector.extract_strided_slice %27 {offsets = [2, 0], sizes = [1, 128], strides = [1, 1]} : vector<7x128xf32> to vector<1x128xf32>
    %49 = vector.broadcast %48 : vector<1x128xf32> to vector<7x128xf32>
    %50 = arith.addf %49, %14 : vector<7x128xf32>
    %51 = arith.cmpf ogt, %50, %45 : vector<7x128xf32>
    %52 = arith.select %51, %50, %45 : vector<7x128xi1>, vector<7x128xf32>
    %c2_i32 = arith.constant 2 : i32
    %53 = vector.broadcast %c2_i32 : i32 to vector<7x128xi32>
    %54 = arith.select %51, %53, %47 : vector<7x128xi1>, vector<7x128xi32>
    %55 = vector.extract_strided_slice %27 {offsets = [3, 0], sizes = [1, 128], strides = [1, 1]} : vector<7x128xf32> to vector<1x128xf32>
    %56 = vector.broadcast %55 : vector<1x128xf32> to vector<7x128xf32>
    %57 = arith.addf %56, %17 : vector<7x128xf32>
    %58 = arith.cmpf ogt, %57, %52 : vector<7x128xf32>
    %59 = arith.select %58, %57, %52 : vector<7x128xi1>, vector<7x128xf32>
    %c3_i32 = arith.constant 3 : i32
    %60 = vector.broadcast %c3_i32 : i32 to vector<7x128xi32>
    %61 = arith.select %58, %60, %54 : vector<7x128xi1>, vector<7x128xi32>
    %62 = vector.extract_strided_slice %27 {offsets = [4, 0], sizes = [1, 128], strides = [1, 1]} : vector<7x128xf32> to vector<1x128xf32>
    %63 = vector.broadcast %62 : vector<1x128xf32> to vector<7x128xf32>
    %64 = arith.addf %63, %20 : vector<7x128xf32>
    %65 = arith.cmpf ogt, %64, %59 : vector<7x128xf32>
    %66 = arith.select %65, %64, %59 : vector<7x128xi1>, vector<7x128xf32>
    %c4_i32 = arith.constant 4 : i32
    %67 = vector.broadcast %c4_i32 : i32 to vector<7x128xi32>
    %68 = arith.select %65, %67, %61 : vector<7x128xi1>, vector<7x128xi32>
    %69 = vector.extract_strided_slice %27 {offsets = [5, 0], sizes = [1, 128], strides = [1, 1]} : vector<7x128xf32> to vector<1x128xf32>
    %70 = vector.broadcast %69 : vector<1x128xf32> to vector<7x128xf32>
    %71 = arith.addf %70, %23 : vector<7x128xf32>
    %72 = arith.cmpf ogt, %71, %66 : vector<7x128xf32>
    %73 = arith.select %72, %71, %66 : vector<7x128xi1>, vector<7x128xf32>
    %c5_i32 = arith.constant 5 : i32
    %74 = vector.broadcast %c5_i32 : i32 to vector<7x128xi32>
    %75 = arith.select %72, %74, %68 : vector<7x128xi1>, vector<7x128xi32>
    %76 = vector.extract_strided_slice %27 {offsets = [6, 0], sizes = [1, 128], strides = [1, 1]} : vector<7x128xf32> to vector<1x128xf32>
    %77 = vector.broadcast %76 : vector<1x128xf32> to vector<7x128xf32>
    %78 = arith.addf %77, %26 : vector<7x128xf32>
    %79 = arith.cmpf ogt, %78, %73 : vector<7x128xf32>
    %80 = arith.select %79, %78, %73 : vector<7x128xi1>, vector<7x128xf32>
    %c6_i32 = arith.constant 6 : i32
    %81 = vector.broadcast %c6_i32 : i32 to vector<7x128xi32>
    %82 = arith.select %79, %81, %75 : vector<7x128xi1>, vector<7x128xi32>
    %83 = arith.index_cast %c0_i32_8 : i32 to index
    %c0_14 = arith.constant 0 : index
    %c0_15 = arith.constant 0 : index
    %84 = vector.load %arg10[%83, %c0_14, %c0_15] : memref<4x7x128xi32, #tpu.memory_space<vmem>>, vector<1x7x128xi32>
    %85 = vector.shape_cast %84 : vector<1x7x128xi32> to vector<7x128xi32>
    %86 = vector.shape_cast %82 : vector<7x128xi32> to vector<1x7x128xi32>
    tpu.vector_store %arg10[%83, %c0_14, %c0_15], %86 {strides = array<i32>} : memref<4x7x128xi32, #tpu.memory_space<vmem>>, vector<1x7x128xi32>,
    %cst_16 = arith.constant 0.000000e+00 : f32
    %87 = vector.broadcast %cst_16 : f32 to vector<1x128xf32>
    %88 = arith.cmpf ogt, %36, %87 : vector<1x128xf32>
    %89 = arith.addf %80, %33 : vector<7x128xf32>
    %90 = vector.shape_cast %88 : vector<1x128xi1> to vector<1x128xi1>
    %91 = vector.broadcast %90 : vector<1x128xi1> to vector<7x128xi1>
    %92 = arith.select %91, %89, %27 : vector<7x128xi1>, vector<7x128xf32>
    %c1_i32_17 = arith.constant 1 : i32
    %93 = arith.index_cast %c1_i32_17 : i32 to index
    %c0_18 = arith.constant 0 : index
    %c0_19 = arith.constant 0 : index
    %94 = vector.load %arg2[%93, %c0_18, %c0_19] : memref<4x32x128xbf16, #tpu.memory_space<vmem>>, vector<1x32x128xbf16>
    %95 = vector.shape_cast %94 : vector<1x32x128xbf16> to vector<32x128xbf16>
    %cst_20 = arith.constant dense<0.000000e+00> : vector<7x128xf32>
    %96 = tpu.matmul %3, %95, %cst_20 {dimension_numbers = #tpu.dot_dimension_numbers<[1], [0], [0], [1], [0, 0, 1, 1], [], []>} : vector<7x32xbf16>, vector<32x128xbf16>, vector<7x128xf32> -> vector<7x128xf32>
    %97 = vector.broadcast %4 : vector<7x1xf32> to vector<7x128xf32>
    %98 = arith.addf %96, %97 : vector<7x128xf32>
    %99 = arith.index_cast %c1_i32_17 : i32 to index
    %c0_21 = arith.constant 0 : index
    %c0_22 = arith.constant 0 : index
    %100 = vector.load %arg3[%99, %c0_21, %c0_22] : memref<4x1x128xf32, #tpu.memory_space<vmem>>, vector<1x1x128xf32>
    %101 = vector.shape_cast %100 : vector<1x1x128xf32> to vector<1x128xf32>
    %102 = vector.extract_strided_slice %92 {offsets = [0, 0], sizes = [1, 128], strides = [1, 1]} : vector<7x128xf32> to vector<1x128xf32>
    %103 = vector.broadcast %102 : vector<1x128xf32> to vector<7x128xf32>
    %104 = arith.addf %103, %8 : vector<7x128xf32>
    %c0_i32_23 = arith.constant 0 : i32
    %105 = vector.broadcast %c0_i32_23 : i32 to vector<7x128xi32>
    %106 = vector.extract_strided_slice %92 {offsets = [1, 0], sizes = [1, 128], strides = [1, 1]} : vector<7x128xf32> to vector<1x128xf32>
    %107 = vector.broadcast %106 : vector<1x128xf32> to vector<7x128xf32>
    %108 = arith.addf %107, %11 : vector<7x128xf32>
    %109 = arith.cmpf ogt, %108, %104 : vector<7x128xf32>
    %110 = arith.select %109, %108, %104 : vector<7x128xi1>, vector<7x128xf32>
    %c1_i32_24 = arith.constant 1 : i32
    %111 = vector.broadcast %c1_i32_24 : i32 to vector<7x128xi32>
    %112 = arith.select %109, %111, %105 : vector<7x128xi1>, vector<7x128xi32>
    %113 = vector.extract_strided_slice %92 {offsets = [2, 0], sizes = [1, 128], strides = [1, 1]} : vector<7x128xf32> to vector<1x128xf32>
    %114 = vector.broadcast %113 : vector<1x128xf32> to vector<7x128xf32>
    %115 = arith.addf %114, %14 : vector<7x128xf32>
    %116 = arith.cmpf ogt, %115, %110 : vector<7x128xf32>
    %117 = arith.select %116, %115, %110 : vector<7x128xi1>, vector<7x128xf32>
    %c2_i32_25 = arith.constant 2 : i32
    %118 = vector.broadcast %c2_i32_25 : i32 to vector<7x128xi32>
    %119 = arith.select %116, %118, %112 : vector<7x128xi1>, vector<7x128xi32>
    %120 = vector.extract_strided_slice %92 {offsets = [3, 0], sizes = [1, 128], strides = [1, 1]} : vector<7x128xf32> to vector<1x128xf32>
    %121 = vector.broadcast %120 : vector<1x128xf32> to vector<7x128xf32>
    %122 = arith.addf %121, %17 : vector<7x128xf32>
    %123 = arith.cmpf ogt, %122, %117 : vector<7x128xf32>
    %124 = arith.select %123, %122, %117 : vector<7x128xi1>, vector<7x128xf32>
    %c3_i32_26 = arith.constant 3 : i32
    %125 = vector.broadcast %c3_i32_26 : i32 to vector<7x128xi32>
    %126 = arith.select %123, %125, %119 : vector<7x128xi1>, vector<7x128xi32>
    %127 = vector.extract_strided_slice %92 {offsets = [4, 0], sizes = [1, 128], strides = [1, 1]} : vector<7x128xf32> to vector<1x128xf32>
    %128 = vector.broadcast %127 : vector<1x128xf32> to vector<7x128xf32>
    %129 = arith.addf %128, %20 : vector<7x128xf32>
    %130 = arith.cmpf ogt, %129, %124 : vector<7x128xf32>
    %131 = arith.select %130, %129, %124 : vector<7x128xi1>, vector<7x128xf32>
    %c4_i32_27 = arith.constant 4 : i32
    %132 = vector.broadcast %c4_i32_27 : i32 to vector<7x128xi32>
    %133 = arith.select %130, %132, %126 : vector<7x128xi1>, vector<7x128xi32>
    %134 = vector.extract_strided_slice %92 {offsets = [5, 0], sizes = [1, 128], strides = [1, 1]} : vector<7x128xf32> to vector<1x128xf32>
    %135 = vector.broadcast %134 : vector<1x128xf32> to vector<7x128xf32>
    %136 = arith.addf %135, %23 : vector<7x128xf32>
    %137 = arith.cmpf ogt, %136, %131 : vector<7x128xf32>
    %138 = arith.select %137, %136, %131 : vector<7x128xi1>, vector<7x128xf32>
    %c5_i32_28 = arith.constant 5 : i32
    %139 = vector.broadcast %c5_i32_28 : i32 to vector<7x128xi32>
    %140 = arith.select %137, %139, %133 : vector<7x128xi1>, vector<7x128xi32>
    %141 = vector.extract_strided_slice %92 {offsets = [6, 0], sizes = [1, 128], strides = [1, 1]} : vector<7x128xf32> to vector<1x128xf32>
    %142 = vector.broadcast %141 : vector<1x128xf32> to vector<7x128xf32>
    %143 = arith.addf %142, %26 : vector<7x128xf32>
    %144 = arith.cmpf ogt, %143, %138 : vector<7x128xf32>
    %145 = arith.select %144, %143, %138 : vector<7x128xi1>, vector<7x128xf32>
    %c6_i32_29 = arith.constant 6 : i32
    %146 = vector.broadcast %c6_i32_29 : i32 to vector<7x128xi32>
    %147 = arith.select %144, %146, %140 : vector<7x128xi1>, vector<7x128xi32>
    %148 = arith.index_cast %c1_i32_17 : i32 to index
    %c0_30 = arith.constant 0 : index
    %c0_31 = arith.constant 0 : index
    %149 = vector.load %arg10[%148, %c0_30, %c0_31] : memref<4x7x128xi32, #tpu.memory_space<vmem>>, vector<1x7x128xi32>
    %150 = vector.shape_cast %149 : vector<1x7x128xi32> to vector<7x128xi32>
    %151 = vector.shape_cast %147 : vector<7x128xi32> to vector<1x7x128xi32>
    tpu.vector_store %arg10[%148, %c0_30, %c0_31], %151 {strides = array<i32>} : memref<4x7x128xi32, #tpu.memory_space<vmem>>, vector<1x7x128xi32>,
    %cst_32 = arith.constant 0.000000e+00 : f32
    %152 = vector.broadcast %cst_32 : f32 to vector<1x128xf32>
    %153 = arith.cmpf ogt, %101, %152 : vector<1x128xf32>
    %154 = arith.addf %145, %98 : vector<7x128xf32>
    %155 = vector.shape_cast %153 : vector<1x128xi1> to vector<1x128xi1>
    %156 = vector.broadcast %155 : vector<1x128xi1> to vector<7x128xi1>
    %157 = arith.select %156, %154, %92 : vector<7x128xi1>, vector<7x128xf32>
    %c2_i32_33 = arith.constant 2 : i32
    %158 = arith.index_cast %c2_i32_33 : i32 to index
    %c0_34 = arith.constant 0 : index
    %c0_35 = arith.constant 0 : index
    %159 = vector.load %arg2[%158, %c0_34, %c0_35] : memref<4x32x128xbf16, #tpu.memory_space<vmem>>, vector<1x32x128xbf16>
    %160 = vector.shape_cast %159 : vector<1x32x128xbf16> to vector<32x128xbf16>
    %cst_36 = arith.constant dense<0.000000e+00> : vector<7x128xf32>
    %161 = tpu.matmul %3, %160, %cst_36 {dimension_numbers = #tpu.dot_dimension_numbers<[1], [0], [0], [1], [0, 0, 1, 1], [], []>} : vector<7x32xbf16>, vector<32x128xbf16>, vector<7x128xf32> -> vector<7x128xf32>
    %162 = vector.broadcast %4 : vector<7x1xf32> to vector<7x128xf32>
    %163 = arith.addf %161, %162 : vector<7x128xf32>
    %164 = arith.index_cast %c2_i32_33 : i32 to index
    %c0_37 = arith.constant 0 : index
    %c0_38 = arith.constant 0 : index
    %165 = vector.load %arg3[%164, %c0_37, %c0_38] : memref<4x1x128xf32, #tpu.memory_space<vmem>>, vector<1x1x128xf32>
    %166 = vector.shape_cast %165 : vector<1x1x128xf32> to vector<1x128xf32>
    %167 = vector.extract_strided_slice %157 {offsets = [0, 0], sizes = [1, 128], strides = [1, 1]} : vector<7x128xf32> to vector<1x128xf32>
    %168 = vector.broadcast %167 : vector<1x128xf32> to vector<7x128xf32>
    %169 = arith.addf %168, %8 : vector<7x128xf32>
    %c0_i32_39 = arith.constant 0 : i32
    %170 = vector.broadcast %c0_i32_39 : i32 to vector<7x128xi32>
    %171 = vector.extract_strided_slice %157 {offsets = [1, 0], sizes = [1, 128], strides = [1, 1]} : vector<7x128xf32> to vector<1x128xf32>
    %172 = vector.broadcast %171 : vector<1x128xf32> to vector<7x128xf32>
    %173 = arith.addf %172, %11 : vector<7x128xf32>
    %174 = arith.cmpf ogt, %173, %169 : vector<7x128xf32>
    %175 = arith.select %174, %173, %169 : vector<7x128xi1>, vector<7x128xf32>
    %c1_i32_40 = arith.constant 1 : i32
    %176 = vector.broadcast %c1_i32_40 : i32 to vector<7x128xi32>
    %177 = arith.select %174, %176, %170 : vector<7x128xi1>, vector<7x128xi32>
    %178 = vector.extract_strided_slice %157 {offsets = [2, 0], sizes = [1, 128], strides = [1, 1]} : vector<7x128xf32> to vector<1x128xf32>
    %179 = vector.broadcast %178 : vector<1x128xf32> to vector<7x128xf32>
    %180 = arith.addf %179, %14 : vector<7x128xf32>
    %181 = arith.cmpf ogt, %180, %175 : vector<7x128xf32>
    %182 = arith.select %181, %180, %175 : vector<7x128xi1>, vector<7x128xf32>
    %c2_i32_41 = arith.constant 2 : i32
    %183 = vector.broadcast %c2_i32_41 : i32 to vector<7x128xi32>
    %184 = arith.select %181, %183, %177 : vector<7x128xi1>, vector<7x128xi32>
    %185 = vector.extract_strided_slice %157 {offsets = [3, 0], sizes = [1, 128], strides = [1, 1]} : vector<7x128xf32> to vector<1x128xf32>
    %186 = vector.broadcast %185 : vector<1x128xf32> to vector<7x128xf32>
    %187 = arith.addf %186, %17 : vector<7x128xf32>
    %188 = arith.cmpf ogt, %187, %182 : vector<7x128xf32>
    %189 = arith.select %188, %187, %182 : vector<7x128xi1>, vector<7x128xf32>
    %c3_i32_42 = arith.constant 3 : i32
    %190 = vector.broadcast %c3_i32_42 : i32 to vector<7x128xi32>
    %191 = arith.select %188, %190, %184 : vector<7x128xi1>, vector<7x128xi32>
    %192 = vector.extract_strided_slice %157 {offsets = [4, 0], sizes = [1, 128], strides = [1, 1]} : vector<7x128xf32> to vector<1x128xf32>
    %193 = vector.broadcast %192 : vector<1x128xf32> to vector<7x128xf32>
    %194 = arith.addf %193, %20 : vector<7x128xf32>
    %195 = arith.cmpf ogt, %194, %189 : vector<7x128xf32>
    %196 = arith.select %195, %194, %189 : vector<7x128xi1>, vector<7x128xf32>
    %c4_i32_43 = arith.constant 4 : i32
    %197 = vector.broadcast %c4_i32_43 : i32 to vector<7x128xi32>
    %198 = arith.select %195, %197, %191 : vector<7x128xi1>, vector<7x128xi32>
    %199 = vector.extract_strided_slice %157 {offsets = [5, 0], sizes = [1, 128], strides = [1, 1]} : vector<7x128xf32> to vector<1x128xf32>
    %200 = vector.broadcast %199 : vector<1x128xf32> to vector<7x128xf32>
    %201 = arith.addf %200, %23 : vector<7x128xf32>
    %202 = arith.cmpf ogt, %201, %196 : vector<7x128xf32>
    %203 = arith.select %202, %201, %196 : vector<7x128xi1>, vector<7x128xf32>
    %c5_i32_44 = arith.constant 5 : i32
    %204 = vector.broadcast %c5_i32_44 : i32 to vector<7x128xi32>
    %205 = arith.select %202, %204, %198 : vector<7x128xi1>, vector<7x128xi32>
    %206 = vector.extract_strided_slice %157 {offsets = [6, 0], sizes = [1, 128], strides = [1, 1]} : vector<7x128xf32> to vector<1x128xf32>
    %207 = vector.broadcast %206 : vector<1x128xf32> to vector<7x128xf32>
    %208 = arith.addf %207, %26 : vector<7x128xf32>
    %209 = arith.cmpf ogt, %208, %203 : vector<7x128xf32>
    %210 = arith.select %209, %208, %203 : vector<7x128xi1>, vector<7x128xf32>
    %c6_i32_45 = arith.constant 6 : i32
    %211 = vector.broadcast %c6_i32_45 : i32 to vector<7x128xi32>
    %212 = arith.select %209, %211, %205 : vector<7x128xi1>, vector<7x128xi32>
    %213 = arith.index_cast %c2_i32_33 : i32 to index
    %c0_46 = arith.constant 0 : index
    %c0_47 = arith.constant 0 : index
    %214 = vector.load %arg10[%213, %c0_46, %c0_47] : memref<4x7x128xi32, #tpu.memory_space<vmem>>, vector<1x7x128xi32>
    %215 = vector.shape_cast %214 : vector<1x7x128xi32> to vector<7x128xi32>
    %216 = vector.shape_cast %212 : vector<7x128xi32> to vector<1x7x128xi32>
    tpu.vector_store %arg10[%213, %c0_46, %c0_47], %216 {strides = array<i32>} : memref<4x7x128xi32, #tpu.memory_space<vmem>>, vector<1x7x128xi32>,
    %cst_48 = arith.constant 0.000000e+00 : f32
    %217 = vector.broadcast %cst_48 : f32 to vector<1x128xf32>
    %218 = arith.cmpf ogt, %166, %217 : vector<1x128xf32>
    %219 = arith.addf %210, %163 : vector<7x128xf32>
    %220 = vector.shape_cast %218 : vector<1x128xi1> to vector<1x128xi1>
    %221 = vector.broadcast %220 : vector<1x128xi1> to vector<7x128xi1>
    %222 = arith.select %221, %219, %157 : vector<7x128xi1>, vector<7x128xf32>
    %c3_i32_49 = arith.constant 3 : i32
    %223 = arith.index_cast %c3_i32_49 : i32 to index
    %c0_50 = arith.constant 0 : index
    %c0_51 = arith.constant 0 : index
    %224 = vector.load %arg2[%223, %c0_50, %c0_51] : memref<4x32x128xbf16, #tpu.memory_space<vmem>>, vector<1x32x128xbf16>
    %225 = vector.shape_cast %224 : vector<1x32x128xbf16> to vector<32x128xbf16>
    %cst_52 = arith.constant dense<0.000000e+00> : vector<7x128xf32>
    %226 = tpu.matmul %3, %225, %cst_52 {dimension_numbers = #tpu.dot_dimension_numbers<[1], [0], [0], [1], [0, 0, 1, 1], [], []>} : vector<7x32xbf16>, vector<32x128xbf16>, vector<7x128xf32> -> vector<7x128xf32>
    %227 = vector.broadcast %4 : vector<7x1xf32> to vector<7x128xf32>
    %228 = arith.addf %226, %227 : vector<7x128xf32>
    %229 = arith.index_cast %c3_i32_49 : i32 to index
    %c0_53 = arith.constant 0 : index
    %c0_54 = arith.constant 0 : index
    %230 = vector.load %arg3[%229, %c0_53, %c0_54] : memref<4x1x128xf32, #tpu.memory_space<vmem>>, vector<1x1x128xf32>
    %231 = vector.shape_cast %230 : vector<1x1x128xf32> to vector<1x128xf32>
    %232 = vector.extract_strided_slice %222 {offsets = [0, 0], sizes = [1, 128], strides = [1, 1]} : vector<7x128xf32> to vector<1x128xf32>
    %233 = vector.broadcast %232 : vector<1x128xf32> to vector<7x128xf32>
    %234 = arith.addf %233, %8 : vector<7x128xf32>
    %c0_i32_55 = arith.constant 0 : i32
    %235 = vector.broadcast %c0_i32_55 : i32 to vector<7x128xi32>
    %236 = vector.extract_strided_slice %222 {offsets = [1, 0], sizes = [1, 128], strides = [1, 1]} : vector<7x128xf32> to vector<1x128xf32>
    %237 = vector.broadcast %236 : vector<1x128xf32> to vector<7x128xf32>
    %238 = arith.addf %237, %11 : vector<7x128xf32>
    %239 = arith.cmpf ogt, %238, %234 : vector<7x128xf32>
    %240 = arith.select %239, %238, %234 : vector<7x128xi1>, vector<7x128xf32>
    %c1_i32_56 = arith.constant 1 : i32
    %241 = vector.broadcast %c1_i32_56 : i32 to vector<7x128xi32>
    %242 = arith.select %239, %241, %235 : vector<7x128xi1>, vector<7x128xi32>
    %243 = vector.extract_strided_slice %222 {offsets = [2, 0], sizes = [1, 128], strides = [1, 1]} : vector<7x128xf32> to vector<1x128xf32>
    %244 = vector.broadcast %243 : vector<1x128xf32> to vector<7x128xf32>
    %245 = arith.addf %244, %14 : vector<7x128xf32>
    %246 = arith.cmpf ogt, %245, %240 : vector<7x128xf32>
    %247 = arith.select %246, %245, %240 : vector<7x128xi1>, vector<7x128xf32>
    %c2_i32_57 = arith.constant 2 : i32
    %248 = vector.broadcast %c2_i32_57 : i32 to vector<7x128xi32>
    %249 = arith.select %246, %248, %242 : vector<7x128xi1>, vector<7x128xi32>
    %250 = vector.extract_strided_slice %222 {offsets = [3, 0], sizes = [1, 128], strides = [1, 1]} : vector<7x128xf32> to vector<1x128xf32>
    %251 = vector.broadcast %250 : vector<1x128xf32> to vector<7x128xf32>
    %252 = arith.addf %251, %17 : vector<7x128xf32>
    %253 = arith.cmpf ogt, %252, %247 : vector<7x128xf32>
    %254 = arith.select %253, %252, %247 : vector<7x128xi1>, vector<7x128xf32>
    %c3_i32_58 = arith.constant 3 : i32
    %255 = vector.broadcast %c3_i32_58 : i32 to vector<7x128xi32>
    %256 = arith.select %253, %255, %249 : vector<7x128xi1>, vector<7x128xi32>
    %257 = vector.extract_strided_slice %222 {offsets = [4, 0], sizes = [1, 128], strides = [1, 1]} : vector<7x128xf32> to vector<1x128xf32>
    %258 = vector.broadcast %257 : vector<1x128xf32> to vector<7x128xf32>
    %259 = arith.addf %258, %20 : vector<7x128xf32>
    %260 = arith.cmpf ogt, %259, %254 : vector<7x128xf32>
    %261 = arith.select %260, %259, %254 : vector<7x128xi1>, vector<7x128xf32>
    %c4_i32_59 = arith.constant 4 : i32
    %262 = vector.broadcast %c4_i32_59 : i32 to vector<7x128xi32>
    %263 = arith.select %260, %262, %256 : vector<7x128xi1>, vector<7x128xi32>
    %264 = vector.extract_strided_slice %222 {offsets = [5, 0], sizes = [1, 128], strides = [1, 1]} : vector<7x128xf32> to vector<1x128xf32>
    %265 = vector.broadcast %264 : vector<1x128xf32> to vector<7x128xf32>
    %266 = arith.addf %265, %23 : vector<7x128xf32>
    %267 = arith.cmpf ogt, %266, %261 : vector<7x128xf32>
    %268 = arith.select %267, %266, %261 : vector<7x128xi1>, vector<7x128xf32>
    %c5_i32_60 = arith.constant 5 : i32
    %269 = vector.broadcast %c5_i32_60 : i32 to vector<7x128xi32>
    %270 = arith.select %267, %269, %263 : vector<7x128xi1>, vector<7x128xi32>
    %271 = vector.extract_strided_slice %222 {offsets = [6, 0], sizes = [1, 128], strides = [1, 1]} : vector<7x128xf32> to vector<1x128xf32>
    %272 = vector.broadcast %271 : vector<1x128xf32> to vector<7x128xf32>
    %273 = arith.addf %272, %26 : vector<7x128xf32>
    %274 = arith.cmpf ogt, %273, %268 : vector<7x128xf32>
    %275 = arith.select %274, %273, %268 : vector<7x128xi1>, vector<7x128xf32>
    %c6_i32_61 = arith.constant 6 : i32
    %276 = vector.broadcast %c6_i32_61 : i32 to vector<7x128xi32>
    %277 = arith.select %274, %276, %270 : vector<7x128xi1>, vector<7x128xi32>
    %278 = arith.index_cast %c3_i32_49 : i32 to index
    %c0_62 = arith.constant 0 : index
    %c0_63 = arith.constant 0 : index
    %279 = vector.load %arg10[%278, %c0_62, %c0_63] : memref<4x7x128xi32, #tpu.memory_space<vmem>>, vector<1x7x128xi32>
    %280 = vector.shape_cast %279 : vector<1x7x128xi32> to vector<7x128xi32>
    %281 = vector.shape_cast %277 : vector<7x128xi32> to vector<1x7x128xi32>
    tpu.vector_store %arg10[%278, %c0_62, %c0_63], %281 {strides = array<i32>} : memref<4x7x128xi32, #tpu.memory_space<vmem>>, vector<1x7x128xi32>,
    %cst_64 = arith.constant 0.000000e+00 : f32
    %282 = vector.broadcast %cst_64 : f32 to vector<1x128xf32>
    %283 = arith.cmpf ogt, %231, %282 : vector<1x128xf32>
    %284 = arith.addf %275, %228 : vector<7x128xf32>
    %285 = vector.shape_cast %283 : vector<1x128xi1> to vector<1x128xi1>
    %286 = vector.broadcast %285 : vector<1x128xi1> to vector<7x128xi1>
    %287 = arith.select %286, %284, %222 : vector<7x128xi1>, vector<7x128xf32>
    %c4_i32_65 = arith.constant 4 : i32
    %c0_66 = arith.constant 0 : index
    %c0_67 = arith.constant 0 : index
    %288 = vector.load %arg11[%c0_66, %c0_67] : memref<7x128xf32, #tpu.memory_space<vmem>>, vector<7x128xf32>
    tpu.vector_store %arg11[%c0_66, %c0_67], %287 {strides = array<i32>} : memref<7x128xf32, #tpu.memory_space<vmem>>, vector<7x128xf32>,
    %c1_i32_68 = arith.constant 1 : i32
    %289 = arith.cmpi eq, %arg1, %c1_i32_68 : i32
    %290 = arith.extui %289 : i1 to i32
    %c0_i32_69 = arith.constant 0 : i32
    %291 = arith.cmpi ne, %290, %c0_i32_69 : i32
    scf.if %291 {
      %c0_70 = arith.constant 0 : index
      %c0_71 = arith.constant 0 : index
      %292 = vector.load %arg7[%c0_70, %c0_71] : memref<7x1xf32, #tpu.memory_space<vmem>>, vector<7x1xf32>
      %293 = vector.broadcast %292 : vector<7x1xf32> to vector<7x128xf32>
      %294 = arith.addf %287, %293 : vector<7x128xf32>
      %cst_72 = arith.constant dense<0xFF800000> : vector<128xf32>
      %295 = vector.multi_reduction <maximumf>, %294, %cst_72 [0] : vector<7x128xf32> to vector<128xf32>
      %296 = vector.shape_cast %295 : vector<128xf32> to vector<1x128xf32>
      %297 = tpu.iota {dimensions = array<i32: 0>} : vector<7x128xi32>
      %298 = vector.broadcast %296 : vector<1x128xf32> to vector<7x128xf32>
      %299 = arith.cmpf oge, %294, %298 : vector<7x128xf32>
      %c7_i32 = arith.constant 7 : i32
      %300 = vector.broadcast %c7_i32 : i32 to vector<7x128xi32>
      %301 = arith.select %299, %297, %300 : vector<7x128xi1>, vector<7x128xi32>
      %cst_73 = arith.constant dense<2147483647> : vector<128xi32>
      %302 = vector.multi_reduction <minsi>, %301, %cst_73 [0] : vector<7x128xi32> to vector<128xi32>
      %303 = vector.shape_cast %302 : vector<128xi32> to vector<1x128xi32>
      %c0_74 = arith.constant 0 : index
      %c0_75 = arith.constant 0 : index
      %304 = vector.load %arg8[%c0_74, %c0_75] : memref<1x128xf32, #tpu.memory_space<vmem>>, vector<1x128xf32>
      tpu.vector_store %arg8[%c0_74, %c0_75], %296 {strides = array<i32>} : memref<1x128xf32, #tpu.memory_space<vmem>>, vector<1x128xf32>,
      %c0_76 = arith.constant 0 : index
      %c0_77 = arith.constant 0 : index
      %305 = vector.load %arg9[%c0_76, %c0_77] : memref<1x128xi32, #tpu.memory_space<vmem>>, vector<1x128xi32>
      tpu.vector_store %arg9[%c0_76, %c0_77], %303 {strides = array<i32>} : memref<1x128xi32, #tpu.memory_space<vmem>>, vector<1x128xi32>,
    } else {
    }
    return
  }
  func.func @transform_0(%arg0: i32, %arg1: i32) -> (i32, i32, i32) {
    %c0_i32 = arith.constant 0 : i32
    %c0_i32_0 = arith.constant 0 : i32
    return %arg1, %c0_i32, %arg0 : i32, i32, i32
  }
  func.func @transform_1(%arg0: i32, %arg1: i32) -> (i32, i32, i32) {
    %c0_i32 = arith.constant 0 : i32
    %c0_i32_0 = arith.constant 0 : i32
    return %arg1, %c0_i32, %arg0 : i32, i32, i32
  }
  func.func @transform_2(%arg0: i32, %arg1: i32) -> (i32, i32) {
    %c0_i32 = arith.constant 0 : i32
    %c0_i32_0 = arith.constant 0 : i32
    %c0_i32_1 = arith.constant 0 : i32
    return %c0_i32, %c0_i32_0 : i32, i32
  }
  func.func @transform_3(%arg0: i32, %arg1: i32) -> (i32, i32) {
    %c0_i32 = arith.constant 0 : i32
    %c0_i32_0 = arith.constant 0 : i32
    %c0_i32_1 = arith.constant 0 : i32
    return %c0_i32, %c0_i32_0 : i32, i32
  }
  func.func @transform_4(%arg0: i32, %arg1: i32) -> (i32, i32) {
    %c0_i32 = arith.constant 0 : i32
    %c0_i32_0 = arith.constant 0 : i32
    %c0_i32_1 = arith.constant 0 : i32
    return %c0_i32, %c0_i32_0 : i32, i32
  }
  func.func @transform_5(%arg0: i32, %arg1: i32) -> (i32, i32) {
    %c0_i32 = arith.constant 0 : i32
    %c0_i32_0 = arith.constant 0 : i32
    %c0_i32_1 = arith.constant 0 : i32
    return %c0_i32, %c0_i32_0 : i32, i32
  }
  func.func @transform_6(%arg0: i32, %arg1: i32) -> (i32, i32) {
    %c0_i32 = arith.constant 0 : i32
    %c0_i32_0 = arith.constant 0 : i32
    return %c0_i32, %arg0 : i32, i32
  }
  func.func @transform_7(%arg0: i32, %arg1: i32) -> (i32, i32) {
    %c0_i32 = arith.constant 0 : i32
    %c0_i32_0 = arith.constant 0 : i32
    return %c0_i32, %arg0 : i32, i32
  }
  func.func @transform_8(%arg0: i32, %arg1: i32) -> (i32, i32, i32) {
    %c0_i32 = arith.constant 0 : i32
    %c0_i32_0 = arith.constant 0 : i32
    return %arg1, %c0_i32, %arg0 : i32, i32, i32
  }
}

</mosaic_0001>

<bundles_post_ra>
// kernel: tpu_custom_call.1
= control target key start
LH: loop header
LB: loop body
LE: loop exit
PB: predicated region body
PF: predicated region fallthrough
CT: control target
= control target key end

     0   :  { %14 = vsyncpa [#allocation4], 0  ;;  %s1881_s0 = inlined_call_operand.hbm [shape: bf16[8,32,128], index: 0, kind: input, shape index: {}]   ;;  %s1882_s1 = inlined_call_operand.vmem [shape: f32[8,1,128], index: 1, kind: input, shape index: {}]   ;;  %s1883_s2 = inlined_call_operand.vmem [shape: bf16[7,32], index: 2, kind: input, shape index: {}]   ;;  %s1884_s3 = inlined_call_operand.vmem [shape: f32[7,1], index: 3, kind: input, shape index: {}]   ;;  %s1885_s4 = inlined_call_operand.vmem [shape: f32[7,7], index: 4, kind: input, shape index: {}]   ;;  %s1886_s5 = inlined_call_operand.vmem [shape: f32[7,1], index: 5, kind: input, shape index: {}]   ;;  %s1887_s6 = inlined_call_operand.hbm [shape: f32[1,128], index: 6, kind: output, shape index: {0}]   ;;  %s1888_s7 = inlined_call_operand.hbm [shape: s32[1,128], index: 7, kind: output, shape index: {1}]   ;;  %s1889_s8 = inlined_call_operand.vmem [shape: s32[8,7,128], index: 8, kind: output, shape index: {2}]  }
   0x1   :  { %16 = vsyncpa [#allocation4 + $0x1], 0 }
   0x2   :  { %17 = vsyncpa [#allocation5], 0 }
   0x3   :  { %18 = vsyncpa [#allocation8], 0  ;;  %s1520_s27 = smov 0   ;;  %s1522_s28 = smov 0  }
   0x4   :  { %s1524_s29 = smov 0   ;;  %s1526_s30 = smov 0  }
   0x5   :  { %s1528_s9 = smov 0   ;;  %s1530_s10 = smov 0  }
   0x6 LB: > { %s1120_s11 = sadd.s32 4294967295, %s1457_s10   ;;  %s33_s12 = sadd.s32 1, %s1453_s9  ;;  %s1457_s10 = sphi %s1530_s10, %s24_s10   ;;  %s1453_s9 = sphi %s1528_s9, %s1898_s9   ;;  %s1449_s30 = sphi %s1526_s30, %s1897_s30   ;;  %s1445_s29 = sphi %s1524_s29, %s1896_s29   ;;  %s1441_s28 = sphi %s1522_s28, %s1895_s28   ;;  %s1437_s27 = sphi %s1520_s27, %s1894_s27  }
   0x7   : > { %p34_p0 = scmp.ge.s32.totalorder %s33_s12, 2  ;;  %s45_s13 = sadd.s32 1, %s1445_s29 }
   0x8   : > { %p52_p1 = scmp.ne.s32.totalorder %s1445_s29, %s1441_s28  ;;  %p53_p2 = scmp.eq.s32.totalorder %s1457_s10, 0 }
   0x9   : > { %s1900_s12 = smov (%p34_p0, %s33_s12), 0  ;;  %p58_p4 = scmp.ne.s32.totalorder %s1441_s28, %s1437_s27 }
   0xa   : > { %p1556_p3 = por %p53_p2, %p52_p1  ;;  %s40_s15 = ssub.s32 %s1453_s9, %s1900_s12 }
   0xb   : > { %p59_p5 = scmp.eq.s32.totalorder %s1120_s11, 0  ;;  %p43_p6 = scmp.eq.s32.totalorder %s40_s15, 0 }
   0xc   : > { %p1231_p8 = scmp.lt.s32.totalorder %s1457_s10, 2  ;;  %s286_s18 = sand.u32 1, %s1445_s29  }
   0xd   : > { %p1565_p7 = por %p59_p5, %p58_p4  ;;  %s1172_s19 = sshll.u32 %s1453_s9, 10 }
   0xe   : > { %s1571_s17 = scalar_select %p43_p6, %s1445_s29, %s45_s13  }
   0xf   : > { %s1124_s20 = sshll.u32 %s286_s18, 6  ;;  %s1578_s23 = scalar_lea.hbm %s1881_s0, %s1172_s19 }
  0x10   : > { %s290_s24 = scalar_lea.vmem [#allocation3], %s1124_s20  ;;  %p1582_p9 = pnand %p1231_p8, %p1556_p3 }
  0x11   : > { %s299_s25 = sshll.u32 %s290_s24, 4  ;;  %s1588_s27 = scalar_lea.sflag [#allocation4], %s286_s18  ;;  %s1586_s25 = int_to_ptr.vmem [resolvable:$true] %s299_s25 }
  0x12   : > { %s1317_s13 = scalar_lea.hbm %s1578_s23, 1024  ;;  %p1319_p11 = pneg %p1582_p9 }
  0x13   : > { %p1318_p10 = scmp.ne.s32.totalorder %s1578_s23, %s1317_s13  ;;  %s1322_s19 = scalar_lea.hbm %s1881_s0, 2048 }
  0x14   : > { %p1323_p0 = scmp.lt.u32.totalorder %s1578_s23, %s1881_s0  ;;  %p1324_p1 = scmp.lt.u32.totalorder %s1322_s19, %s1317_s13 }
  0x15   : > { %p1320_p12 = pnand %p1319_p11, %p1318_p10  ;;  %p1326_p3 = scmp.lt.u32.totalorder %s1317_s13, %s1578_s23 }
  0x16   : > { %p1325_p2 = por %p1324_p1, %p1323_p0 }
  0x17   : > { %p1321_p13 = pneg %p1320_p12 }
  0x18   : > { %p1327_p4 = por %p1326_p3, %p1325_p2 }
  0x1a   : > { %p1328_p5 = pnand %p1327_p4, %p1321_p13 }
  0x1c   : > { %1331 = shalt.err (!%p1328_p5)
}
  0x1d   : > { %s1332_s18 = scalar_lea.vmem %s1586_s25, 1024  ;;  %s1459_s22 = smov [#allocation3]  }
  0x1e   : > { %p1333_p6 = scmp.ne.s32.totalorder %s1586_s25, %s1332_s18  ;;  %s1337_s24 = sshll.u32 %s1459_s22, 4  ;;  %s1338_s24 = int_to_ptr.vmem [resolvable:$false] %s1337_s24 }
  0x1f   : > { %s1339_s15 = scalar_lea.vmem %s1338_s24, 2048  ;;  %p1340_p12 = scmp.lt.s32.totalorder %s1586_s25, %s1338_s24 }
  0x20   : > { %p1335_p8 = pnand %p1333_p6, %p1319_p11  ;;  %p1341_p0 = scmp.lt.s32.totalorder %s1339_s15, %s1332_s18 }
  0x22   : > { %p1336_p10 = pneg %p1335_p8  ;;  %p1342_p1 = por %p1341_p0, %p1340_p12 }
  0x24   : > { %p1343_p2 = pnand %p1342_p1, %p1336_p10 }
  0x26   : > { %1346 = shalt.err (!%p1343_p2)
}
  0x27   : > { %s1460_s13 = smov 64   ;;  %s1461_s14 = smov 4  }
  0x28   : > { %1230 = dma.hbm_to_vmem [thread:$0]  (!%p1582_p9), %s1578_s23, 1024, %s1586_s25, %s1588_s27, %s1460_s13, %s1460_s13, %s1461_s14  }
  0x29   : > { %p1128_p11 = scmp.ge.s32.totalorder %s1457_s10, 1  ;;  %p318_p13 = scmp.lt.s32.totalorder %s1457_s10, 3 }
  0x2b   : > { %p319_p3 = pnand %p1128_p11, %p318_p13 }
  0x2c   : > { %s324_s19 = sand.u32 (!%p319_p3), 1, %s1441_s28  }
  0x2d   : > { %322 = sbr.rel (%p319_p3) target bundleno = 539 (0x21b), region = 44  ;;  %s1129_s20 = sshll.u32 (!%p319_p3), %s324_s19, 6 }
  0x2e   : > { %s325_s21 = scalar_lea.sflag (!%p319_p3), [#allocation4], %s324_s19  ;;  %s1619_s18 = scalar_lea.vmem (!%p319_p3), [#allocation3], %s1129_s20 }
  0x34   : > { %1424 = dma.done.wait (%p1565_p7), %s325_s21, 1024  }
  0x35   : > { %1426 = vsyncadd (%p1565_p7), %s325_s21, 4294966272  ;;  %s1130_s22 = sshll.u32 %s1449_s30, 2  ;;  %p1133_p9 = scmp.ne.s32.totalorder %s1449_s30, 0 }
  0x36   : > { %p373_p4 = scmp.lt.s32.totalorder %s1130_s22, 7  ;;  %v394_v0 = vlaneseq (!%p1133_p9)  ;;  %v1462_v2 = vmov (!%p1133_p9), -10000.0  }
  0x37   : > { %393 = sbr.rel (%p1133_p9) target bundleno = 62 (0x3e), region = 52 }
  0x38   : > { %s1902_s22 = smov (!%p373_p4, %s1130_s22), 7  ;;  %v395_v1 = vshrl.u32 (!%p1133_p9), %v394_v0, 7 }
  0x39   : > { %s1629_s26 = scalar_lea.vmem %s1882_s1, %s1902_s22  ;;  %s1132_s27 = sshll.u32 %s1902_s22, 3 }
  0x3a   : > { %s1634_s13 = scalar_lea.vmem %s1889_s8, %s1132_s27  ;;  %vm396_vm0 = vcmp.eq.s32.totalorder (!%p1133_p9), %v395_v1, 5 }
  0x3b   : > { %v397_v3 = vsel (!%p1133_p9), %vm396_vm0, 0.0, %v1462_v2 }
  0x3c   : > { %398 = vst [vmem:[#allocation2] sm:$0x7f] (!%p1133_p9), %v397_v3 }
  0x3e PF: > { %v1308_v4 = vld [vmem:[%s1619_s18] sm:$0xff]   ;;  %v1463_v5 = vmov 0.0   ;;  %v1309_v6 = vld [vmem:[%s1619_s18 + $0x10] sm:$0xff]   ;;  %v1310_v7 = vld [vmem:[%s1619_s18 + $0x8] sm:$0xff]   ;;  %vm1464_vm1 = vmmov 0   ;;  %v1465_v10 = vmov 2   ;;  %v498_v23 = vlaneseq }
  0x3f   : > { %1185 = vmatprep.subr.bf16.mxu0 %v1463_v5  ;;  %1193 = vmatprep.subr.bf16.mxu1 %v1463_v5  ;;  %v1311_v8 = vld [vmem:[%s1619_s18 + $0x18] sm:$0xff]   ;;  %vm453_vm2 = vcmask 261120   ;;  %v1312_v11 = vld [vmem:[%s1619_s18 + $0x20] sm:$0xff]   ;;  %v1466_v12 = vmov 0   ;;  %v1313_v13 = vld [vmem:[%s1619_s18 + $0x30] sm:$0xff]   ;;  %v1467_v17 = vmov 3  }
  0x40   : > { %1186 = vmatpush3.bf16.msra.mxu0 %v1308_v4  ;;  %1189 = vmatprep.mubr.msk.bf16.mxu0 %vm1464_vm1, %v1463_v5  ;;  %v399_v9 = vld [vmem:[%s1883_s2] sm:$0xf]  ;;  %v1314_v15 = vld [vmem:[%s1619_s18 + $0x28] sm:$0xff]   ;;  %v1468_v18 = vmov 1   ;;  %v1469_v19 = vmov 4   ;;  %v1470_v20 = vmov 5  }
  0x41   : > { %1194 = vmatpush3.bf16.msra.mxu1 %v1309_v6  ;;  %1187 = vmatprep.subr.bf16.mxu0 %v1463_v5  ;;  %v401_v14 = vld [vmem:[%s1885_s4] sm:$0x7f]  ;;  %v1471_v21 = vmov 6   ;;  %v1665_v24 = vshrl.u32 %v498_v23, 7  ;;  %p1164_p7 = scmp.ne.s32.totalorder %s1449_s30, 1 }
  0x42   : > { %1195 = vmatprep.subr.bf16.mxu1 %v1463_v5  ;;  %1197 = vmatprep.mubr.msk.bf16.mxu1 %vm1464_vm1, %v1463_v5  ;;  %v1315_v16 = vld [vmem:[%s1619_s18 + $0x38] sm:$0xff]  }
  0x43   : > { %1301 = vset.pattern.permute.xlu1 %v1465_v10  ;;  %1299 = vset.pattern.permute.xlu0 %v1466_v12  ;;  %v400_v22 = vld [vmem:[%s1884_s3] sm:$0x7f]  ;;  %v1668_v25 = vsub.s32 0, %v1665_v24  ;;  %v1675_v28 = vsub.s32 2, %v1665_v24  ;;  %v1678_v29 = vsub.s32 1, %v1665_v24  ;;  %v1685_v32 = vsub.s32 3, %v1665_v24 }
  0x44   : > { %1188 = vmatpush3.bf16.msra.mxu0 %v1310_v7  ;;  %412 = vperm.xlu1 %1301, %v401_v14   ;;  %v1672_v27 = vld [vmem:[#allocation2] sm:$0x7f]  ;;  %v1694_v36 = vsub.s32 4, %v1665_v24  ;;  %v1700_v39 = vsub.s32 5, %v1665_v24  ;;  %v1709_v44 = vsub.s32 6, %v1665_v24 }
  0x45   : > { %1196 = vmatpush3.bf16.msra.mxu1 %v1311_v8  ;;  %1201 = vmatprep.subr.bf16.mxu0 %v1463_v5  ;;  %v501_v30 = vrot.slane %v1672_v27, %v1668_v25  ;;  %v514_v33 = vrot.slane %v1672_v27, %v1675_v28  ;;  %v506_v34 = vrot.slane %v1672_v27, %v1678_v29  ;;  %v497_v2 = vld [vmem:[%s1629_s26] sm:$0x1] }
  0x46   : > { %1209 = vmatprep.subr.bf16.mxu1 %v1463_v5  ;;  %404 = vperm.xlu0 %1299, %v401_v14   ;;  %v522_v38 = vrot.slane %v1672_v27, %v1685_v32  ;;  %v530_v43 = vrot.slane %v1672_v27, %v1694_v36  ;;  %v538_v47 = vrot.slane %v1672_v27, %v1700_v39  ;;  %vm552_vm9 = vcmp.gt.f32.partialorder %v497_v2, 0.0 }
  0x47   : > { %1190 = vmatmul.mubr.msk.bf16.vlgmr.msra.gmra.mrb[0].mxu0 %vm453_vm2, %v399_v9  ;;  %v546_v52 = vrot.slane %v1672_v27, %v1709_v44  ;;  %v554_v3 = vsel %vm552_vm9, 1, %v1466_v12 }
  0x48   : > { %1198 = vmatmul.mubr.msk.bf16.vlgmr.msra.gmra.mrb[0].mxu1 %vm453_vm2, %v399_v9  ;;  %1202 = vmatpush3.bf16.msra.mxu0 %v1312_v11 }
  0x49   : > { %1210 = vmatpush3.bf16.msra.mxu1 %v1313_v13  ;;  %1203 = vmatprep.subr.bf16.mxu0 %v1463_v5 }
  0x4a   : > { %1211 = vmatprep.subr.bf16.mxu1 %v1463_v5  ;;  %1205 = vmatprep.mubr.msk.bf16.mxu0 %vm1464_vm1, %v1463_v5 }
  0x4b   : > { %1213 = vmatprep.mubr.msk.bf16.mxu1 %vm1464_vm1, %v1463_v5  ;;  %1302 = vset.pattern.permute.xlu1 %v1467_v17  ;;  %v558_v5 = vrot.slane %v554_v3, %v1668_v25 }
  0x4c   : > { %1204 = vmatpush3.bf16.msra.mxu0 %v1314_v15  ;;  %416 = vperm.xlu1 %1302, %v401_v14  }
  0x4d   : > { %1212 = vmatpush3.bf16.msra.mxu1 %v1315_v16  ;;  %1300 = vset.pattern.permute.xlu0 %v1468_v18  ;;  %vm559_vm10 = vcmp.eq.s32.totalorder %v558_v5, 1 }
  0x4e   : > { %408 = vperm.xlu0 %1300, %v401_v14  }
  0x4f   : > { %1206 = vmatmul.mubr.msk.bf16.vlgmr.msra.gmra.mrb[4].mxu0 %vm453_vm2, %v399_v9 }
  0x50   : > { %1214 = vmatmul.mubr.msk.bf16.vlgmr.msra.gmra.mrb[4].mxu1 %vm453_vm2, %v399_v9  ;;  %1303 = vset.pattern.permute.xlu1 %v1469_v19 }
  0x51   : > { %420 = vperm.xlu1 %1303, %v401_v14  }
  0x52   : > { %1304 = vset.pattern.permute.xlu0 %v1470_v20 }
  0x53   : > { %424 = vperm.xlu0 %1304, %v401_v14  }
  0x55   : > { %1305 = vset.pattern.permute.xlu1 %v1471_v21  ;;  %v1144_v21 = vld [vmem:[%s1629_s26 + $0x1] sm:$0x1] }
  0x56   : > { %428 = vperm.xlu1 %1305, %v401_v14   ;;  %vm675_vm12 = vcmp.gt.f32.partialorder %v1144_v21, 0.0 }
  0x57   : > { %1307 = vset.pattern.permute.xlu0 %v1466_v12 }
  0x5a   : > { %1306 = vset.pattern.permute.xlu1 %v1466_v12 }
  0x5b   : > { %438 = vperm.xlu1 %1306, %v400_v22  }
  0xc3   : > { %v1670_v26 = vpop.permute.xlu1 %412 }
  0xc4   : > { %v515_v41 = vadd.f32 %v514_v33, %v1670_v26 }
  0xc5   : > { %v1682_v31 = vpop.permute.xlu0 %404 }
  0xc6   : > { %v502_v37 = vadd.f32 %v501_v30, %v1682_v31 }
  0xcb   : > { %v1691_v35 = vpop.permute.xlu1 %416 }
  0xcc   : > { %v523_v46 = vadd.f32 %v522_v38, %v1691_v35 }
  0xcd   : > { %v1702_v40 = vpop.permute.xlu0 %408 }
  0xce   : > { %v507_v42 = vadd.f32 %v506_v34, %v1702_v40 }
  0xd0   : > { %v1711_v45 = vpop.permute.xlu1 %420  ;;  %vm508_vm3 = vcmp.gt.f32.partialorder %v507_v42, %v502_v37 }
  0xd1   : > { %v509_v48 = vsel %vm508_vm3, %v507_v42, %v502_v37  ;;  %v510_v49 = vsel %vm508_vm3, 1, %v1466_v12  ;;  %v531_v50 = vadd.f32 %v530_v43, %v1711_v45 }
  0xd2   : > { %vm516_vm4 = vcmp.gt.f32.partialorder %v515_v41, %v509_v48  ;;  %v1718_v51 = vpop.permute.xlu0 %424 }
  0xd3   : > { %v517_v53 = vsel %vm516_vm4, %v515_v41, %v509_v48  ;;  %v518_v54 = vsel %vm516_vm4, 2, %v510_v49  ;;  %v539_v55 = vadd.f32 %v538_v47, %v1718_v51 }
  0xd4   : > { %vm524_vm5 = vcmp.gt.f32.partialorder %v523_v46, %v517_v53 }
  0xd5   : > { %v1723_v56 = vpop.permute.xlu1 %428  ;;  %v525_v57 = vsel %vm524_vm5, %v523_v46, %v517_v53  ;;  %v526_v58 = vsel %vm524_vm5, 3, %v518_v54 }
  0xd6   : > { %vm532_vm6 = vcmp.gt.f32.partialorder %v531_v50, %v525_v57  ;;  %v547_v59 = vadd.f32 %v546_v52, %v1723_v56 }
  0xd7   : > { %v533_v60 = vsel %vm532_vm6, %v531_v50, %v525_v57  ;;  %v534_v61 = vsel %vm532_vm6, 4, %v526_v58  ;;  %v677_v58 = vsel %vm675_vm12, 1, %v1466_v12 }
  0xd8   : > { %vm540_vm7 = vcmp.gt.f32.partialorder %v539_v55, %v533_v60 }
  0xd9   : > { %v542_v62 = vsel %vm540_vm7, 5, %v534_v61  ;;  %v541_v63 = vsel %vm540_vm7, %v539_v55, %v533_v60 }
  0xda   : > { %vm548_vm8 = vcmp.gt.f32.partialorder %v547_v59, %v541_v63  ;;  %v1729_v4 = vpop.permute.xlu1 %438 }
  0xdb   : > { %v549_v0 = vsel %vm548_vm8, %v547_v59, %v541_v63  ;;  %v550_v1 = vsel %vm548_vm8, 6, %v542_v62 }
  0xdc   : > { %551 = vst [vmem:[%s1634_s13] sm:$0x7f] %v550_v1 }
 0x11a   : > { %v491_v6 = vpop.f32.mrb[0].mxu0 }
 0x11b   : > { %v492_v7 = vadd.f32 %v491_v6, %v1729_v4  ;;  %v612_v8 = vpop.f32.mrb[0].mxu1  ;;  %v1191_v9 = vpop.f32.mrb[1].mxu0 }
 0x11c   : > { %v494_v10 = vpop.f32.mrb[2].mxu0  ;;  %v1199_v11 = vpop.f32.mrb[1].mxu1  ;;  %v613_v5 = vadd.f32 %v612_v8, %v1729_v4 }
 0x11d   : > { %v553_v13 = vadd.f32 %v549_v0, %v492_v7  ;;  %v1192_v14 = vpop.f32.mrb[3].mxu0  ;;  %v615_v15 = vpop.f32.mrb[2].mxu1  ;;  %v681_v0 = vrot.slane %v677_v58, %v1668_v25 }
 0x11e   : > { %v1200_v16 = vpop.f32.mrb[3].mxu1  ;;  %v1153_v15 = vld [vmem:[%s1629_s26 + $0x2] sm:$0x1] }
 0x11f   : > { %v560_v17 = vsel %vm559_vm10, %v553_v13, %v1672_v27  ;;  %vm682_vm2 = vcmp.eq.s32.totalorder %v681_v0, 1  ;;  %vm798_vm4 = vcmp.gt.f32.partialorder %v1153_v15, 0.0 }
 0x120   : > { %v623_v18 = vrot.slane %v560_v17, %v1668_v25  ;;  %v628_v19 = vrot.slane %v560_v17, %v1678_v29  ;;  %v636_v20 = vrot.slane %v560_v17, %v1675_v28  ;;  %v644_v30 = vrot.slane %v560_v17, %v1685_v32 }
 0x121   : > { %v652_v38 = vrot.slane %v560_v17, %v1694_v36  ;;  %v660_v50 = vrot.slane %v560_v17, %v1700_v39  ;;  %v668_v57 = vrot.slane %v560_v17, %v1709_v44 }
 0x122   : > { %v624_v22 = vadd.f32 %v623_v18, %v1682_v31  ;;  %v629_v23 = vadd.f32 %v628_v19, %v1702_v40  ;;  %v1741_v33 = vpop.f32.mrb[4].mxu0  ;;  %v637_v27 = vadd.f32 %v636_v20, %v1670_v26  ;;  %v645_v49 = vadd.f32 %v644_v30, %v1691_v35 }
 0x123   : > { %v1743_v34 = vpop.f32.mrb[4].mxu1  ;;  %v1207_v37 = vpop.f32.mrb[5].mxu0  ;;  %v653_v55 = vadd.f32 %v652_v38, %v1711_v45  ;;  %v661_v61 = vadd.f32 %v660_v50, %v1718_v51  ;;  %v669_v1 = vadd.f32 %v668_v57, %v1723_v56 }
 0x124   : > { %vm630_vm11 = vcmp.gt.f32.partialorder %v629_v23, %v624_v22  ;;  %v738_v41 = vpop.f32.mrb[6].mxu0  ;;  %v1215_v42 = vpop.f32.mrb[5].mxu1 }
 0x125   : > { %v631_v43 = vsel %vm630_vm11, %v629_v23, %v624_v22  ;;  %v632_v46 = vsel %vm630_vm11, 1, %v1466_v12  ;;  %v1208_v47 = vpop.f32.mrb[7].mxu0  ;;  %v861_v48 = vpop.f32.mrb[6].mxu1  ;;  %v800_v41 = vsel %vm798_vm4, 1, %v1466_v12 }
 0x126   : > { %vm638_vm13 = vcmp.gt.f32.partialorder %v637_v27, %v631_v43  ;;  %v1216_v52 = vpop.f32.mrb[7].mxu1 }
 0x127   : > { %v639_v53 = vsel %vm638_vm13, %v637_v27, %v631_v43  ;;  %v640_v54 = vsel %vm638_vm13, 2, %v632_v46 }
 0x128   : > { %vm646_vm14 = vcmp.gt.f32.partialorder %v645_v49, %v639_v53 }
 0x129   : > { %v647_v59 = vsel %vm646_vm14, %v645_v49, %v639_v53  ;;  %v648_v60 = vsel %vm646_vm14, 3, %v640_v54  ;;  %v804_v49 = vrot.slane %v800_v41, %v1668_v25  ;;  %v736_v54 = vadd.f32 %v1741_v33, %v1729_v4 }
 0x12a   : > { %vm654_vm15 = vcmp.gt.f32.partialorder %v653_v55, %v647_v59 }
 0x12b   : > { %v655_v62 = vsel %vm654_vm15, %v653_v55, %v647_v59  ;;  %v656_v63 = vsel %vm654_vm15, 4, %v648_v60  ;;  %vm805_vm10 = vcmp.eq.s32.totalorder %v804_v49, 1 }
 0x12c   : > { %vm662_vm0 = vcmp.gt.f32.partialorder %v661_v61, %v655_v62 }
 0x12d   : > { %v663_v2 = vsel %vm662_vm0, %v661_v61, %v655_v62  ;;  %v664_v3 = vsel %vm662_vm0, 5, %v656_v63  ;;  %v1162_v63 = vld [vmem:[%s1629_s26 + $0x3] sm:$0x1] }
 0x12e   : > { %vm670_vm1 = vcmp.gt.f32.partialorder %v669_v1, %v663_v2  ;;  %vm921_vm12 = vcmp.gt.f32.partialorder %v1162_v63, 0.0 }
 0x12f   : > { %v671_v6 = vsel %vm670_vm1, %v669_v1, %v663_v2  ;;  %v672_v7 = vsel %vm670_vm1, 6, %v664_v3 }
 0x130   : > { %1145 = vst [vmem:[%s1634_s13 + $0x8] sm:$0x7f] %v672_v7  ;;  %v676_v9 = vadd.f32 %v671_v6, %v613_v5 }
 0x132   : > { %v683_v10 = vsel %vm682_vm2, %v676_v9, %v560_v17 }
 0x133   : > { %v746_v11 = vrot.slane %v683_v10, %v1668_v25  ;;  %v751_v13 = vrot.slane %v683_v10, %v1678_v29  ;;  %v759_v14 = vrot.slane %v683_v10, %v1675_v28  ;;  %v767_v8 = vrot.slane %v683_v10, %v1685_v32 }
 0x134   : > { %v775_v20 = vrot.slane %v683_v10, %v1694_v36  ;;  %v783_v23 = vrot.slane %v683_v10, %v1700_v39  ;;  %v791_v38 = vrot.slane %v683_v10, %v1709_v44 }
 0x135   : > { %v747_v16 = vadd.f32 %v746_v11, %v1682_v31  ;;  %v752_v18 = vadd.f32 %v751_v13, %v1702_v40  ;;  %v760_v19 = vadd.f32 %v759_v14, %v1670_v26  ;;  %v768_v22 = vadd.f32 %v767_v8, %v1691_v35 }
 0x136   : > { %v776_v27 = vadd.f32 %v775_v20, %v1711_v45  ;;  %v784_v46 = vadd.f32 %v783_v23, %v1718_v51  ;;  %v792_v50 = vadd.f32 %v791_v38, %v1723_v56 }
 0x137   : > { %vm753_vm3 = vcmp.gt.f32.partialorder %v752_v18, %v747_v16 }
 0x138   : > { %v754_v21 = vsel %vm753_vm3, %v752_v18, %v747_v16  ;;  %v755_v17 = vsel %vm753_vm3, 1, %v1466_v12  ;;  %vm942_vm3 = vcmask (!%p1164_p7), 1046528  }
 0x139   : > { %vm761_vm5 = vcmp.gt.f32.partialorder %v760_v19, %v754_v21 }
 0x13a   : > { %v762_v30 = vsel %vm761_vm5, %v760_v19, %v754_v21  ;;  %v763_v37 = vsel %vm761_vm5, 2, %v755_v17 }
 0x13b   : > { %vm769_vm6 = vcmp.gt.f32.partialorder %v768_v22, %v762_v30 }
 0x13c   : > { %v770_v42 = vsel %vm769_vm6, %v768_v22, %v762_v30  ;;  %v771_v43 = vsel %vm769_vm6, 3, %v763_v37 }
 0x13d   : > { %vm777_vm7 = vcmp.gt.f32.partialorder %v776_v27, %v770_v42 }
 0x13e   : > { %v778_v47 = vsel %vm777_vm7, %v776_v27, %v770_v42  ;;  %v779_v48 = vsel %vm777_vm7, 4, %v771_v43 }
 0x13f   : > { %vm785_vm8 = vcmp.gt.f32.partialorder %v784_v46, %v778_v47 }
 0x140   : > { %v786_v52 = vsel %vm785_vm8, %v784_v46, %v778_v47  ;;  %v787_v53 = vsel %vm785_vm8, 5, %v779_v48 }
 0x141   : > { %vm793_vm9 = vcmp.gt.f32.partialorder %v792_v50, %v786_v52 }
 0x142   : > { %v794_v55 = vsel %vm793_vm9, %v792_v50, %v786_v52  ;;  %v795_v57 = vsel %vm793_vm9, 6, %v787_v53 }
 0x143   : > { %1154 = vst [vmem:[%s1634_s13 + $0x10] sm:$0x7f] %v795_v57  ;;  %v799_v58 = vadd.f32 %v794_v55, %v736_v54 }
 0x145   : > { %v806_v59 = vsel %vm805_vm10, %v799_v58, %v683_v10 }
 0x146   : > { %v869_v60 = vrot.slane %v806_v59, %v1668_v25  ;;  %v874_v61 = vrot.slane %v806_v59, %v1678_v29  ;;  %v882_v62 = vrot.slane %v806_v59, %v1675_v28  ;;  %v890_v33 = vrot.slane %v806_v59, %v1685_v32 }
 0x147   : > { %v898_v3 = vrot.slane %v806_v59, %v1694_v36  ;;  %v906_v28 = vrot.slane %v806_v59, %v1700_v39  ;;  %v914_v32 = vrot.slane %v806_v59, %v1709_v44  ;;  %v859_v44 = vadd.f32 %v1743_v34, %v1729_v4 }
 0x148   : > { %v870_v0 = vadd.f32 %v869_v60, %v1682_v31  ;;  %v875_v1 = vadd.f32 %v874_v61, %v1702_v40  ;;  %v883_v2 = vadd.f32 %v882_v62, %v1670_v26  ;;  %v891_v29 = vadd.f32 %v890_v33, %v1691_v35 }
 0x149   : > { %v899_v40 = vadd.f32 %v898_v3, %v1711_v45  ;;  %v923_v26 = vsel %vm921_vm12, 1, %v1466_v12  ;;  %v907_v10 = vadd.f32 %v906_v28, %v1718_v51  ;;  %v915_v39 = vadd.f32 %v914_v32, %v1723_v56 }
 0x14a   : > { %vm876_vm11 = vcmp.gt.f32.partialorder %v875_v1, %v870_v0  ;;  %v927_v35 = vrot.slane %v923_v26, %v1668_v25  ;;  %v935_v25 = vld [vmem:[%s1886_s5] sm:$0x7f] (!%p1164_p7)  ;;  %v1472_v51 = vmov (!%p1164_p7), 0  }
 0x14b   : > { %v877_v5 = vsel %vm876_vm11, %v875_v1, %v870_v0  ;;  %v878_v6 = vsel %vm876_vm11, 1, %v1466_v12  ;;  %1316 = vset.pattern.permute.xlu0 (!%p1164_p7), %v1472_v51 }
 0x14c   : > { %vm884_vm13 = vcmp.gt.f32.partialorder %v883_v2, %v877_v5  ;;  %vm928_vm2 = vcmp.eq.s32.totalorder %v927_v35, 1  ;;  %938 = vperm.xlu0 (!%p1164_p7), %1316, %v935_v25  }
 0x14d   : > { %v885_v7 = vsel %vm884_vm13, %v883_v2, %v877_v5  ;;  %v886_v31 = vsel %vm884_vm13, 2, %v878_v6 }
 0x14e   : > { %vm892_vm14 = vcmp.gt.f32.partialorder %v891_v29, %v885_v7 }
 0x14f   : > { %v893_v9 = vsel %vm892_vm14, %v891_v29, %v885_v7  ;;  %v894_v36 = vsel %vm892_vm14, 3, %v886_v31 }
 0x150   : > { %vm900_vm15 = vcmp.gt.f32.partialorder %v899_v40, %v893_v9 }
 0x151   : > { %v901_v11 = vsel %vm900_vm15, %v899_v40, %v893_v9  ;;  %v902_v13 = vsel %vm900_vm15, 4, %v894_v36 }
 0x152   : > { %vm908_vm0 = vcmp.gt.f32.partialorder %v907_v10, %v901_v11 }
 0x153   : > { %v909_v14 = vsel %vm908_vm0, %v907_v10, %v901_v11  ;;  %v910_v15 = vsel %vm908_vm0, 5, %v902_v13  ;;  %934 = sbr.rel (%p1164_p7) target bundleno = 491 (0x1eb), region = 56 }
 0x154   : > { %vm916_vm1 = vcmp.gt.f32.partialorder %v915_v39, %v909_v14 }
 0x155   : > { %v917_v12 = vsel %vm916_vm1, %v915_v39, %v909_v14  ;;  %v918_v45 = vsel %vm916_vm1, 6, %v910_v15 }
 0x156   : > { %1163 = vst [vmem:[%s1634_s13 + $0x18] sm:$0x7f] %v918_v45  ;;  %v922_v16 = vadd.f32 %v917_v12, %v859_v44 }
 0x158   : > { %v929_v18 = vsel %vm928_vm2, %v922_v16, %v806_v59 }
 0x159   : > { %930 = vst [vmem:[#allocation2] sm:$0x7f] %v929_v18 }
 0x1cb   : > { %v939_v56 = vpop.permute.xlu0 %938 }
 0x1cc   : > { %v941_v4 = vadd.f32 %v939_v56, %v929_v18 }
 0x1ce   : > { %v943_v34 = vsel %vm942_vm3, %v941_v4, -inf }
 0x1cf   : > { %v944_v8 = vrot.slane %v943_v34, 4 }
 0x1d1   : > { %v945_v19 = vmax.f32 %v943_v34, %v944_v8 }
 0x1d3   : > { %v946_v20 = vrot.slane %v945_v19, 2 }
 0x1d5   : > { %v947_v21 = vmax.f32 %v945_v19, %v946_v20 }
 0x1d7   : > { %v948_v17 = vrot.slane %v947_v21, 1 }
 0x1d9   : > { %v949_v22 = vmax.f32 %v947_v21, %v948_v17 }
 0x1db   : > { %vm952_vm4 = vcmp.ge.f32.partialorder %v941_v4, %v949_v22  ;;  %964 = vst [vmem:[#allocation6] sm:$0x1] %v949_v22 }
 0x1dc   : > { %v953_v23 = vsel %vm952_vm4, %v1665_v24, 7 }
 0x1dd   : > { %v954_v30 = vsel %vm942_vm3, %v953_v23, 2147483647 }
 0x1de   : > { %v955_v37 = vrot.slane %v954_v30, 4 }
 0x1e0   : > { %vm956_vm5 = vcmp.lt.s32.totalorder %v954_v30, %v955_v37 }
 0x1e1   : > { %v957_v27 = vsel %vm956_vm5, %v954_v30, %v955_v37 }
 0x1e2   : > { %v958_v38 = vrot.slane %v957_v27, 2 }
 0x1e4   : > { %vm959_vm6 = vcmp.lt.s32.totalorder %v957_v27, %v958_v38 }
 0x1e5   : > { %v960_v41 = vsel %vm959_vm6, %v957_v27, %v958_v38 }
 0x1e6   : > { %v961_v42 = vrot.slane %v960_v41, 1 }
 0x1e8   : > { %vm962_vm7 = vcmp.lt.s32.totalorder %v960_v41, %v961_v42 }
 0x1e9   : > { %v963_v43 = vsel %vm962_vm7, %v960_v41, %v961_v42 }
 0x1ea   : > { %965 = vst [vmem:[#allocation7] sm:$0x1] %v963_v43 }
 0x1eb PF: > { %p1807_p5 = scmp.eq.s32.totalorder %s1120_s11, 1  ;;  %s1473_s25 = smov [#allocation6]  }
 0x1ec   : > { %s983_s26 = sshll.u32 %s1473_s25, 4  ;;  %s1474_s27 = smov [#allocation7]   ;;  %s984_s26 = int_to_ptr.vmem [resolvable:$true] %s983_s26 }
 0x1ed   : > { %s996_s24 = sshll.u32 %s1474_s27, 4  ;;  %s1347_s15 = scalar_lea.vmem %s984_s26, 16  ;;  %s1811_s24 = int_to_ptr.vmem [resolvable:$true] %s996_s24 }
 0x1ee   : > { %p1348_p6 = scmp.ne.s32.totalorder %s984_s26, %s1347_s15  ;;  %s1353_s13 = scalar_lea.vmem %s984_s26, 32 }
 0x1ef   : > { %p1354_p12 = scmp.lt.s32.totalorder %s984_s26, %s984_s26  ;;  %p1355_p0 = scmp.lt.s32.totalorder %s1353_s13, %s1347_s15 }
 0x1f0   : > { %p1349_p8 = pnand %p1348_p6, %p1807_p5 }
 0x1f1   : > { %p1356_p1 = por %p1355_p0, %p1354_p12 }
 0x1f2   : > { %p1350_p10 = pneg %p1349_p8 }
 0x1f4   : > { %p1357_p2 = pnand %p1356_p1, %p1350_p10 }
 0x1f6   : > { %1360 = shalt.err (!%p1357_p2)
}
 0x1f7   : > { %s1361_s14 = scalar_lea.hbm %s1887_s6, 16 }
 0x1f8   : > { %p1362_p11 = scmp.ne.s32.totalorder %s1887_s6, %s1361_s14  ;;  %p1367_p4 = scmp.lt.u32.totalorder %s1361_s14, %s1887_s6 }
 0x1fa   : > { %p1363_p13 = pnand %p1362_p11, %p1807_p5 }
 0x1fc   : > { %p1364_p3 = pneg %p1363_p13 }
 0x1fe   : > { %p1369_p9 = pnand %p1367_p4, %p1364_p3 }
 0x200   : > { %1372 = shalt.err (!%p1369_p9)
}
 0x201   : > { %1220 = dma.vmem_to_hbm [thread:$0]  (%p1807_p5), %s984_s26, 16, %s1887_s6, [#allocation5]  }
 0x202   : > { %s1373_s25 = scalar_lea.vmem %s1811_s24, 16  ;;  %s1379_s27 = scalar_lea.vmem %s1811_s24, 32 }
 0x203   : > { %p1374_p7 = scmp.ne.s32.totalorder %s1811_s24, %s1373_s25  ;;  %p1380_p10 = scmp.lt.s32.totalorder %s1811_s24, %s1811_s24 }
 0x204   : > { %p1381_p12 = scmp.lt.s32.totalorder %s1379_s27, %s1373_s25 }
 0x205   : > { %p1375_p6 = pnand %p1374_p7, %p1807_p5 }
 0x206   : > { %p1382_p0 = por %p1381_p12, %p1380_p10 }
 0x207   : > { %p1376_p8 = pneg %p1375_p6 }
 0x209   : > { %p1383_p1 = pnand %p1382_p0, %p1376_p8 }
 0x20b   : > { %1386 = shalt.err (!%p1383_p1)
}
 0x20c   : > { %s1387_s11 = scalar_lea.hbm %s1888_s7, 16 }
 0x20d   : > { %p1388_p2 = scmp.ne.s32.totalorder %s1888_s7, %s1387_s11  ;;  %p1393_p3 = scmp.lt.u32.totalorder %s1387_s11, %s1888_s7 }
 0x20f   : > { %p1389_p11 = pnand %p1388_p2, %p1807_p5 }
 0x211   : > { %p1390_p13 = pneg %p1389_p11 }
 0x213   : > { %p1395_p4 = pnand %p1393_p3, %p1390_p13 }
 0x215   : > { %1398 = shalt.err (!%p1395_p4)
}
 0x216   : > { %1222 = dma.vmem_to_hbm [thread:$0]  (%p1807_p5), %s1811_s24, 16, %s1888_s7, [#allocation8]  }
 0x217   : > { %1428 = dma.done.wait (%p1807_p5), [#allocation5], 16  }
 0x218   : > { %1430 = vsyncadd (%p1807_p5), [#allocation5], 4294967280 }
 0x219   : > { %1432 = dma.done.wait (%p1807_p5), [#allocation8], 16  }
 0x21a   : > { %1434 = vsyncadd (%p1807_p5), [#allocation8], 4294967280 }
 0x21b PF: > { %s24_s10 = sadd.s32 1, %s1457_s10   ;;  %s1894_s27 = smov %s1441_s28 }
 0x21c   : > { %p21_p9 = scmp.ge.s32.totalorder %s24_s10, 4   ;;  %s1895_s28 = smov %s1445_s29 }
 0x21d   : > { %s1896_s29 = smov %s1571_s17  ;;  %s1897_s30 = smov %s1453_s9 }
 0x21e   : > { %s1898_s9 = smov %s1900_s12  ;;  %23 = sbr.rel (!%p21_p9) target bundleno = 6 (0x6), region = 123 }
 0x225   :  { %1028 = vsyncpa [#allocation4], 1 }
 0x226   :  { %1030 = vsyncpa [#allocation4 + $0x1], 1 }
 0x227   :  { %1031 = vsyncpa [#allocation5], 1 }
 0x228   :  { %1033 = vsyncpa [#allocation5 + $0x1], 1 }
 0x229   :  { %1034 = vsyncpa [#allocation8], 1 }

</bundles_post_ra>
